<compile_context>
chip_gen: v5e
topology: v5e:2x2
jax: 0.10.0
libtpu: 0.0.40
codegen_flags: <defaults>
</compile_context>

<pallas_src>
import functools

import jax
import jax.numpy as jnp
from jax import lax
from jax.experimental import pallas as pl
from jax.experimental.pallas import tpu as pltpu

# Safe on every generation (v7x physical VMEM is 64 MiB).
_VMEM_LIMIT_BYTES = 48 * 1024 * 1024


# ----------------------------- Pallas kernels -----------------------------

def _linear_kernel(x_ref, w_ref, b_ref, o_ref):
    # x: (tm, Hin), w: (Hin, Hout) resident, b: (1, Hout)  ->  o: (tm, Hout)
    acc = jnp.dot(x_ref[...], w_ref[...], preferred_element_type=jnp.float32)
    o_ref[...] = (acc + b_ref[...].astype(jnp.float32)).astype(o_ref.dtype)


def _mha_head_kernel(*refs, has_bias):
    # Grid = (B, n_q_tiles, H); head axis (last) is the reduction axis for the
    # fused output projection.
    # Blocks per step:
    #   q:    (1, 1, tq, D)        k/v: (1, 1, Sk, D)
    #   wo:   (H, D, hidden) resident     bo: (1, hidden) resident
    #   bias: (1, 1, tq, Sk)   [optional]
    #   out:  (1, tq, hidden)  (written once, at the last head)
    #   att:  (1, 1, tq, Sk)
    #   acc:  (tq, hidden) f32 VMEM scratch (persists across the head axis)
    if has_bias:
        (q_ref, k_ref, v_ref, wo_ref, bo_ref, bias_ref,
         out_ref, att_ref, acc_ref) = refs
    else:
        (q_ref, k_ref, v_ref, wo_ref, bo_ref,
         out_ref, att_ref, acc_ref) = refs
        bias_ref = None

    h = pl.program_id(2)

    @pl.when(h == 0)
    def _():
        acc_ref[...] = jnp.zeros_like(acc_ref)

    q = q_ref[0, 0]                      # (tq, D), input dtype (scale folded)
    k = k_ref[0, 0]                      # (Sk, D)
    v = v_ref[0, 0]                      # (Sk, D)

    # Scores q @ k^T without materialising k^T; MXU accumulates in f32.
    s = lax.dot_general(q, k, (((1,), (1,)), ((), ())),
                        preferred_element_type=jnp.float32)      # (tq, Sk)
    if bias_ref is not None:
        s = s + bias_ref[0, 0].astype(jnp.float32)

    m = jnp.max(s, axis=-1, keepdims=True)
    p = jnp.exp(s - m)
    # Exact reciprocal: `att` is a returned module output, rows must sum to 1.
    p = p * pl.reciprocal(jnp.sum(p, axis=-1, keepdims=True))
    att_ref[0, 0] = p.astype(att_ref.dtype)

    ctx = jnp.dot(p.astype(v.dtype), v,
                  preferred_element_type=jnp.float32)            # (tq, D)

    # Fused output projection: accumulate ctx_h @ wo_h into the f32 scratch.
    wo_h = wo_ref[h]                                             # (D, hidden)
    acc_ref[...] += jnp.dot(ctx.astype(wo_h.dtype), wo_h,
                            preferred_element_type=jnp.float32)

    @pl.when(h == pl.num_programs(2) - 1)
    def _():
        out_ref[0] = (acc_ref[...]
                      + bo_ref[...].astype(jnp.float32)).astype(out_ref.dtype)


# ------------------------------ host wrappers ------------------------------

def pallas_linear(x, w, b, *, block_m=512):
    """x: (M, Hin), w: (Hin, Hout), b: (Hout,) -> (M, Hout). Tiled over rows."""
    M, Hin = x.shape
    Hout = w.shape[1]
    tm = M if M <= block_m else block_m
    b2 = b.reshape(1, Hout)
    # NOTE: the weight is kept resident ((Hin, Hout) block). For very large
    # hidden sizes on v7x (64 MiB VMEM) add an Hout grid axis or use bf16
    # weights; at this model's hidden sizes (<=1280) it fits comfortably.
    return pl.pallas_call(
        _linear_kernel,
        out_shape=jax.ShapeDtypeStruct((M, Hout), x.dtype),
        grid=(pl.cdiv(M, tm),),
        in_specs=[
            pl.BlockSpec((tm, Hin), lambda i: (i, 0)),
            pl.BlockSpec((Hin, Hout), lambda i: (0, 0)),   # weight resident
            pl.BlockSpec((1, Hout), lambda i: (0, 0)),     # bias resident
        ],
        out_specs=pl.BlockSpec((tm, Hout), lambda i: (i, 0)),
        compiler_params=pltpu.CompilerParams(
            dimension_semantics=("parallel",),
            vmem_limit_bytes=_VMEM_LIMIT_BYTES),
    )(x, w, b2)


def pallas_mha_fused(qh, kh, vh, wo_heads, bo, attn_bias, *, block_q=256):
    """Attention + fused output projection.

    qh: (B, H, Sq, D), kh/vh: (B, H, Sk, D), wo_heads: (H, D, hidden),
    bo: (hidden,). Returns (out (B, Sq, hidden), att (B, H, Sq, Sk)).
    """
    B, H, Sq, D = qh.shape
    Sk = kh.shape[2]
    hidden = wo_heads.shape[2]
    tq = Sq if Sq <= block_q else block_q
    n_q = pl.cdiv(Sq, tq)

    in_specs = [
        pl.BlockSpec((1, 1, tq, D), lambda b, qi, h: (b, h, qi, 0)),
        pl.BlockSpec((1, 1, Sk, D), lambda b, qi, h: (b, h, 0, 0)),
        pl.BlockSpec((1, 1, Sk, D), lambda b, qi, h: (b, h, 0, 0)),
        pl.BlockSpec((H, D, hidden), lambda b, qi, h: (0, 0, 0)),  # wo resident
        pl.BlockSpec((1, hidden), lambda b, qi, h: (0, 0)),        # bo resident
    ]
    inputs = [qh, kh, vh, wo_heads, bo.reshape(1, hidden)]

    has_bias = attn_bias is not None
    if has_bias:
        bias = jnp.asarray(attn_bias)          # keep native dtype (no host cast)
        if bias.ndim != 4 or bias.shape[2] != Sq or bias.shape[3] != Sk:
            raise ValueError(f"attn_bias must be (B|1, H|1, Sq, Sk), got {bias.shape}")
        if bias.shape[0] not in (1, B) or bias.shape[1] not in (1, H):
            raise ValueError(f"attn_bias batch/head dims must be 1 or {B}/{H}, "
                             f"got {bias.shape}")
        bias_batched = bias.shape[0] == B
        bias_headed = bias.shape[1] == H

        def bias_map(b, qi, h, _bb=bias_batched, _bh=bias_headed):
            return (b if _bb else 0, h if _bh else 0, qi, 0)

        in_specs.append(pl.BlockSpec((1, 1, tq, Sk), bias_map))
        inputs.append(bias)

    kernel = functools.partial(_mha_head_kernel, has_bias=has_bias)
    out, att = pl.pallas_call(
        kernel,
        grid=(B, n_q, H),                       # reduction axis (heads) last
        in_specs=in_specs,
        out_specs=(
            pl.BlockSpec((1, tq, hidden), lambda b, qi, h: (b, qi, 0)),
            pl.BlockSpec((1, 1, tq, Sk), lambda b, qi, h: (b, h, qi, 0)),
        ),
        out_shape=(
            jax.ShapeDtypeStruct((B, Sq, hidden), qh.dtype),
            jax.ShapeDtypeStruct((B, H, Sq, Sk), qh.dtype),   # att in input dtype
        ),
        scratch_shapes=[pltpu.VMEM((tq, hidden), jnp.float32)],
        compiler_params=pltpu.CompilerParams(
            dimension_semantics=("parallel", "parallel", "arbitrary"),
            vmem_limit_bytes=_VMEM_LIMIT_BYTES),
    )(*inputs)
    return out, att


class MultiHeadAttentionPallas:
    """JAX/Pallas reimplementation of the PyTorch MultiHeadAttention module."""

    def __init__(self, hidden_size, attention_dropout_rate, num_heads, key,
                 param_dtype=jnp.float32):
        self.num_heads = num_heads
        self.att_size = att_size = hidden_size // num_heads
        self.scale = att_size ** (-0.5)
        self.hidden_size = hidden_size
        del attention_dropout_rate  # eval-mode: dropout is identity

        def linear_init(k, fan_in, fan_out):
            kw, kb = jax.random.split(k)
            bound = 1.0 / (fan_in ** 0.5)
            w = jax.random.uniform(kw, (fan_in, fan_out), param_dtype, -bound, bound)
            b = jax.random.uniform(kb, (fan_out,), param_dtype, -bound, bound)
            return w, b

        k1, k2, k3, k4 = jax.random.split(key, 4)
        proj = num_heads * att_size
        wq, bq = linear_init(k1, hidden_size, proj)
        # Fold the 1/sqrt(d) softmax scale into the q projection:
        # (x @ wq + bq) * scale == x @ (wq*scale) + bq*scale.
        self.wq, self.bq = wq * self.scale, bq * self.scale
        self.wk, self.bk = linear_init(k2, hidden_size, proj)
        self.wv, self.bv = linear_init(k3, hidden_size, proj)
        self.wo, self.bo = linear_init(k4, proj, hidden_size)
        # Head-major view of wo for the fused in-kernel output projection.
        self.wo_heads = self.wo.reshape(num_heads, att_size, hidden_size)

    def __call__(self, q, k, v, attn_bias=None):
        B, Sq, Hs = q.shape
        Sk = k.shape[1]
        nh, d = self.num_heads, self.att_size

        # Projections (row-tiled Pallas matmuls on flattened (B*S, hidden)),
        # kept in the input dtype.
        qp = pallas_linear(q.reshape(B * Sq, Hs), self.wq, self.bq)
        kp = pallas_linear(k.reshape(B * Sk, Hs), self.wk, self.bk)
        vp = pallas_linear(v.reshape(B * Sk, Hs), self.wv, self.bv)

        # Head-major relayout (one fused XLA transpose per tensor) so the
        # attention kernel never does lane-interior head slicing.
        qh = jnp.transpose(qp.reshape(B, Sq, nh, d), (0, 2, 1, 3))
        kh = jnp.transpose(kp.reshape(B, Sk, nh, d), (0, 2, 1, 3))
        vh = jnp.transpose(vp.reshape(B, Sk, nh, d), (0, 2, 1, 3))

        # Attention + softmax + PV + output projection fused in one kernel;
        # ctx never round-trips HBM.
        out, att = pallas_mha_fused(qh, kh, vh, self.wo_heads, self.bo, attn_bias)
        return out, att


# ------------------------------- reference ---------------------------------

def reference_forward(m, q, k, v, attn_bias=None):
    # Plain-JAX reference. The softmax scale is already folded into m.wq/m.bq,
    # which is mathematically identical to the PyTorch module.
    B, Sq, H = q.shape
    Sk = k.shape[1]
    nh, d = m.num_heads, m.att_size
    qp = (q.reshape(B * Sq, H) @ m.wq + m.bq).reshape(B, Sq, nh, d).transpose(0, 2, 1, 3)
    kp = (k.reshape(B * Sk, H) @ m.wk + m.bk).reshape(B, Sk, nh, d).transpose(0, 2, 1, 3)
    vp = (v.reshape(B * Sk, H) @ m.wv + m.bv).reshape(B, Sk, nh, d).transpose(0, 2, 1, 3)
    s = jnp.einsum("bhqd,bhkd->bhqk", qp, kp)
    if attn_bias is not None:
        s = s + attn_bias
    att = jax.nn.softmax(s, axis=3)
    ctx = jnp.einsum("bhqk,bhkd->bhqd", att, vp)
    ctx = ctx.transpose(0, 2, 1, 3).reshape(B * Sq, nh * d)
    out = (ctx @ m.wo + m.bo).reshape(B, Sq, m.hidden_size)
    return out, att


# --------------------------------- main -------------------------------------

if __name__ == "__main__":
    # Shapes consistent with the MMPDIM_DTA attention blocks (hidden_dim=128).
    B, S, hidden, heads = 2, 8, 128, 4

    key = jax.random.PRNGKey(0)
    kparam, kq, kk, kv, kb = jax.random.split(key, 5)

    module = MultiHeadAttentionPallas(hidden_size=hidden,
                                      attention_dropout_rate=0.1,
                                      num_heads=heads,
                                      key=kparam)

    q = jax.random.normal(kq, (B, S, hidden), jnp.float32)
    k = jax.random.normal(kk, (B, S, hidden), jnp.float32)
    v = jax.random.normal(kv, (B, S, hidden), jnp.float32)
    attn_bias = 0.1 * jax.random.normal(kb, (B, heads, S, S), jnp.float32)

    out, att = module(q, k, v, attn_bias)
    out = jax.block_until_ready(out)
    att = jax.block_until_ready(att)

    ref_out, ref_att = reference_forward(module, q, k, v, attn_bias)
    assert out.shape == (B, S, hidden)
    assert att.shape == (B, heads, S, S)
    assert jnp.allclose(out, ref_out, atol=1e-4, rtol=1e-4)
    assert jnp.allclose(att, ref_att, atol=1e-4, rtol=1e-4)

    # Also exercise the bias-less kernel variant (no zero-bias materialisation).
    out_nb, att_nb = module(q, k, v, None)
    out_nb = jax.block_until_ready(out_nb)
    ref_out_nb, ref_att_nb = reference_forward(module, q, k, v, None)
    assert jnp.allclose(out_nb, ref_out_nb, atol=1e-4, rtol=1e-4)
    assert jnp.allclose(att_nb, ref_att_nb, atol=1e-4, rtol=1e-4)

    print("KERNEL_OK")
</pallas_src>

<mosaic_0001>
module attributes {stable_mosaic.version = 11 : i64} {
  func.func @_linear_kernel(%arg0: i32, %arg1: memref<16x128xf32, #tpu.memory_space<vmem>>, %arg2: memref<128x128xf32, #tpu.memory_space<vmem>>, %arg3: memref<1x128xf32, #tpu.memory_space<vmem>>, %arg4: memref<16x128xf32, #tpu.memory_space<vmem>>) attributes {dimension_semantics = [#tpu.dimension_semantics<parallel>], iteration_bounds = array<i64: 1>, scalar_prefetch = 0 : i64, scratch_operands = 0 : i64, tpu.core_type = #tpu.core_type<tc>, window_params = [{transform_indices = @transform_0, window_bounds = array<i64: 16, 128>}, {pipeline_mode = #tpu.pipeline_mode<synchronous>, transform_indices = @transform_1, window_bounds = array<i64: 128, 128>}, {pipeline_mode = #tpu.pipeline_mode<synchronous>, transform_indices = @transform_2, window_bounds = array<i64: 1, 128>}, {transform_indices = @transform_3, window_bounds = array<i64: 16, 128>}]} {
    %c0 = arith.constant 0 : index
    %c0_0 = arith.constant 0 : index
    %0 = vector.load %arg1[%c0, %c0_0] : memref<16x128xf32, #tpu.memory_space<vmem>>, vector<16x128xf32>
    %c0_1 = arith.constant 0 : index
    %c0_2 = arith.constant 0 : index
    %1 = vector.load %arg2[%c0_1, %c0_2] : memref<128x128xf32, #tpu.memory_space<vmem>>, vector<128x128xf32>
    %cst = arith.constant dense<0.000000e+00> : vector<16x128xf32>
    %2 = tpu.matmul %0, %1, %cst {dimension_numbers = #tpu.dot_dimension_numbers<[1], [0], [0], [1], [0, 0, 1, 1], [], []>} : vector<16x128xf32>, vector<128x128xf32>, vector<16x128xf32> -> vector<16x128xf32>
    %c0_3 = arith.constant 0 : index
    %c0_4 = arith.constant 0 : index
    %3 = vector.load %arg3[%c0_3, %c0_4] : memref<1x128xf32, #tpu.memory_space<vmem>>, vector<1x128xf32>
    %4 = vector.broadcast %3 : vector<1x128xf32> to vector<16x128xf32>
    %5 = arith.addf %2, %4 : vector<16x128xf32>
    %c0_5 = arith.constant 0 : index
    %c0_6 = arith.constant 0 : index
    %6 = vector.load %arg4[%c0_5, %c0_6] : memref<16x128xf32, #tpu.memory_space<vmem>>, vector<16x128xf32>
    tpu.vector_store %arg4[%c0_5, %c0_6], %5 {strides = array<i32>} : memref<16x128xf32, #tpu.memory_space<vmem>>, vector<16x128xf32>,
    return
  }
  func.func @transform_0(%arg0: i32) -> (i32, i32) {
    %c0_i32 = arith.constant 0 : i32
    %c0_i32_0 = arith.constant 0 : i32
    return %arg0, %c0_i32 : i32, i32
  }
  func.func @transform_1(%arg0: i32) -> (i32, i32) {
    %c0_i32 = arith.constant 0 : i32
    %c0_i32_0 = arith.constant 0 : i32
    %c0_i32_1 = arith.constant 0 : i32
    return %c0_i32, %c0_i32_0 : i32, i32
  }
  func.func @transform_2(%arg0: i32) -> (i32, i32) {
    %c0_i32 = arith.constant 0 : i32
    %c0_i32_0 = arith.constant 0 : i32
    %c0_i32_1 = arith.constant 0 : i32
    return %c0_i32, %c0_i32_0 : i32, i32
  }
  func.func @transform_3(%arg0: i32) -> (i32, i32) {
    %c0_i32 = arith.constant 0 : i32
    %c0_i32_0 = arith.constant 0 : i32
    return %arg0, %c0_i32 : i32, i32
  }
}

</mosaic_0001>

<bundles_post_ra>
// kernel: tpu_custom_call.1
= control target key start
LH: loop header
LB: loop body
LE: loop exit
PB: predicated region body
PF: predicated region fallthrough
CT: control target
= control target key end

     0   :  { %8 = vsyncpa [#allocation3], 0  ;;  %s260_s0 = inlined_call_operand.hbm [shape: f32[16,128], index: 0, kind: input, shape index: {}]   ;;  %s261_s1 = inlined_call_operand.hbm [shape: f32[128,128], index: 1, kind: input, shape index: {}]   ;;  %s262_s2 = inlined_call_operand.vmem [shape: f32[1,128], index: 2, kind: input, shape index: {}]   ;;  %s263_s3 = inlined_call_operand.hbm [shape: f32[16,128], index: 3, kind: output, shape index: {}]  }
   0x1   :  { %9 = vsyncpa [#allocation6], 0 }
   0x2   :  { %10 = vsyncpa [#allocation4], 0  ;;  %s15_s14 = sshll.u32 %s260_s0, 4  ;;  %s214_s15 = smov [#allocation2]   ;;  %s16_s14 = int_to_ptr.hbm [resolvable:$true] %s15_s14 }
   0x3   :  { %s17_s16 = sshll.u32 %s214_s15, 4  ;;  %s28_s19 = sshll.u32 %s261_s1, 4  ;;  %s18_s16 = int_to_ptr.vmem [resolvable:$true] %s17_s16  ;;  %s29_s19 = int_to_ptr.hbm [resolvable:$true] %s28_s19 }
   0x4   :  { %s215_s20 = smov 128   ;;  %s216_s21 = smov 8  }
   0x5   :  { %23 = dma.hbm_to_vmem [thread:$0]  %s16_s14, 256, %s18_s16, [#allocation3], %s215_s20, %s215_s20, %s216_s21  }
   0x6   :  { %s217_s22 = smov [#allocation5]  }
   0x7   :  { %s30_s23 = sshll.u32 %s217_s22, 4  ;;  %s31_s23 = int_to_ptr.vmem [resolvable:$true] %s30_s23 }
   0x8   :  { %36 = dma.hbm_to_vmem [thread:$0]  %s29_s19, 2048, %s31_s23, [#allocation6], %s215_s20, %s215_s20, %s216_s21  }
   0x9   :  { %208 = dma.done.wait [#allocation3], 256  }
   0xa   :  { %209 = vsyncadd [#allocation3], 4294967040 }
   0xb   :  { %210 = dma.done.wait [#allocation6], 2048  }
   0xc   :  { %211 = vsyncadd [#allocation6], 4294965248  ;;  %v64_v0 = vld [vmem:[#allocation5 + $0x78] sm:$0xff]  ;;  %v63_v1 = vld [vmem:[#allocation5 + $0x70] sm:$0xff]  ;;  %s218_s24 = smov [#allocation7]   ;;  %s100_s28 = sshll.u32 %s263_s3, 4  ;;  %s101_s28 = int_to_ptr.hbm [resolvable:$true] %s100_s28 }
   0xd   :  { %69 = vmatpush.msra.mxu0 %v64_v0  ;;  %114 = vmatpush.msra.mxu1 %v64_v0  ;;  %v62_v2 = vld [vmem:[#allocation5 + $0x68] sm:$0xff]  ;;  %v61_v3 = vld [vmem:[#allocation5 + $0x60] sm:$0xff]  ;;  %v60_v4 = vld [vmem:[#allocation5 + $0x58] sm:$0xff]  ;;  %s98_s25 = sshll.u32 %s218_s24, 4  ;;  %s99_s25 = int_to_ptr.vmem [resolvable:$true] %s98_s25 }
   0xe   :  { %v59_v5 = vld [vmem:[#allocation5 + $0x50] sm:$0xff]  ;;  %v58_v6 = vld [vmem:[#allocation5 + $0x48] sm:$0xff]  ;;  %v57_v7 = vld [vmem:[#allocation5 + $0x40] sm:$0xff] }
   0xf   :  { %70 = vmatpush.msra.mxu0 %v63_v1  ;;  %115 = vmatpush.msra.mxu1 %v63_v1  ;;  %v56_v8 = vld [vmem:[#allocation5 + $0x38] sm:$0xff]  ;;  %v55_v9 = vld [vmem:[#allocation5 + $0x30] sm:$0xff]  ;;  %v54_v10 = vld [vmem:[#allocation5 + $0x28] sm:$0xff] }
  0x10   :  { %v53_v11 = vld [vmem:[#allocation5 + $0x20] sm:$0xff]  ;;  %v52_v12 = vld [vmem:[#allocation5 + $0x18] sm:$0xff]  ;;  %v51_v13 = vld [vmem:[#allocation5 + $0x10] sm:$0xff] }
  0x11   :  { %71 = vmatpush.msra.mxu0 %v62_v2  ;;  %116 = vmatpush.msra.mxu1 %v62_v2  ;;  %v50_v14 = vld [vmem:[#allocation5 + $0x8] sm:$0xff]  ;;  %v49_v15 = vld [vmem:[#allocation5] sm:$0xff]  ;;  %v47_v16 = vld [vmem:[#allocation2] sm:$0xff] }
  0x12   :  { %v48_v17 = vld [vmem:[#allocation2 + $0x8] sm:$0xff]  ;;  %v135_v18 = vld [vmem:[%s262_s2] ss:$0 sm:$0xff] }
  0x13   :  { %72 = vmatpush.msra.mxu0 %v61_v3  ;;  %117 = vmatpush.msra.mxu1 %v61_v3 }
  0x15   :  { %73 = vmatpush.msra.mxu0 %v60_v4  ;;  %118 = vmatpush.msra.mxu1 %v60_v4 }
  0x17   :  { %74 = vmatpush.msra.mxu0 %v59_v5  ;;  %119 = vmatpush.msra.mxu1 %v59_v5 }
  0x19   :  { %75 = vmatpush.msra.mxu0 %v58_v6  ;;  %120 = vmatpush.msra.mxu1 %v58_v6 }
  0x1b   :  { %76 = vmatpush.msra.mxu0 %v57_v7  ;;  %121 = vmatpush.msra.mxu1 %v57_v7 }
  0x1d   :  { %77 = vmatpush.msra.mxu0 %v56_v8  ;;  %122 = vmatpush.msra.mxu1 %v56_v8 }
  0x1f   :  { %78 = vmatpush.msra.mxu0 %v55_v9  ;;  %123 = vmatpush.msra.mxu1 %v55_v9 }
  0x21   :  { %79 = vmatpush.msra.mxu0 %v54_v10  ;;  %124 = vmatpush.msra.mxu1 %v54_v10 }
  0x23   :  { %80 = vmatpush.msra.mxu0 %v53_v11  ;;  %125 = vmatpush.msra.mxu1 %v53_v11 }
  0x25   :  { %81 = vmatpush.msra.mxu0 %v52_v12  ;;  %126 = vmatpush.msra.mxu1 %v52_v12 }
  0x27   :  { %82 = vmatpush.msra.mxu0 %v51_v13  ;;  %127 = vmatpush.msra.mxu1 %v51_v13 }
  0x29   :  { %83 = vmatpush.msra.mxu0 %v50_v14  ;;  %128 = vmatpush.msra.mxu1 %v50_v14 }
  0x2b   :  { %84 = vmatpush.msra.mxu0 %v49_v15  ;;  %129 = vmatpush.msra.mxu1 %v49_v15 }
  0x2c   :  { %85 = vmatmul.f32.vlgmr.msra.gmra.mxu0 %v47_v16  ;;  %88 = vmatmul.f32.vlgmr.msra.gmra.mxu1 %v48_v17 }
  0xa9   :  { %v86_v19 = vpop.f32.mrf.mxu0  ;;  %v89_v20 = vpop.f32.mrf.mxu1 }
  0xaa   :  { %v87_v21 = vadd.f32 %v135_v18, %v86_v19  ;;  %v90_v22 = vadd.f32 %v135_v18, %v89_v20 }
  0xac   :  { %92 = vst [vmem:[#allocation7] sm:$0xff] %v87_v21 }
  0xad   :  { %93 = vst [vmem:[#allocation7 + $0x8] sm:$0xff] %v90_v22 }
  0xae   :  { %106 = dma.vmem_to_hbm [thread:$0]  %s99_s25, 256, %s101_s28, [#allocation4], %s215_s20, %s215_s20, %s216_s21  }
  0xaf   :  { %212 = dma.done.wait [#allocation4], 256  }
  0xb0   :  { %213 = vsyncadd [#allocation4], 4294967040 }
  0xb1   :  { %111 = vsyncpa [#allocation3], 1 }
  0xb2   :  { %112 = vsyncpa [#allocation6], 1 }
  0xb3   :  { %113 = vsyncpa [#allocation4], 1 }

</bundles_post_ra>
